<compile_context>
chip_gen: v6e
topology: v6e:2x2x1
jax: 0.10.0
libtpu: 0.0.40
codegen_flags: <defaults>
</compile_context>

<pallas_src>
import jax
import jax.numpy as jnp
from jax.experimental import pallas as pl
from jax.experimental.pallas import tpu as pltpu


def _round_up(n, m):
    return ((n + m - 1) // m) * m


def _fused_block_kernel(x_ref, w_in_ref, b_in_ref, w2t_ref, b2_ref,
                        gamma_ref, beta_ref, o_ref):
    cp = w2t_ref.shape[0]                 # padded channel count (multiple of 8)
    mm_dtype = w_in_ref.dtype             # matmul operand dtype (bf16 or f32)

    x = x_ref[...]                        # (Cin, TP) channel-major pixel tile

    # Fused conv1 + skip: one MXU pass against the packed (2Cp, Cin) weight.
    h = jnp.dot(w_in_ref[...], x,
                preferred_element_type=jnp.float32) + b_in_ref[...]   # (2Cp, TP)
    skip = h[cp:, :]                      # skip branch, f32            (Cp, TP)

    # LeakyReLU(0.01) in the matmul dtype (feeds conv2 directly).
    h1 = h[:cp, :].astype(mm_dtype)
    h1 = jnp.where(h1 >= 0, h1, 0.01 * h1)

    # conv2 (1x1)
    h2 = jnp.dot(w2t_ref[...], h1,
                 preferred_element_type=jnp.float32) + b2_ref[...]     # (Cp, TP)

    # GDN: nrm[c, p] = beta[c] + sum_j gamma[c, j] * h2[j, p]^2   (kept in f32)
    nrm = jnp.dot(gamma_ref[...], h2 * h2,
                  preferred_element_type=jnp.float32) + beta_ref[...]
    gdn = h2 * jax.lax.rsqrt(nrm)

    o_ref[...] = (gdn + skip).astype(o_ref.dtype)


def residual_block_with_stride(x_nchw, params, *, stride=2, tile_pixels=2048,
                               matmul_dtype=jnp.bfloat16, out_dtype=jnp.float32):
    """x_nchw: (N, Cin, H, W).  Returns (N, Cout, Ho, Wo) in out_dtype (NCHW)."""
    w1, b1, w2, b2, gamma, beta, ws, bs = params
    N, Cin, H, W = x_nchw.shape
    Cout = w1.shape[1]
    Cp = _round_up(Cout, 8)               # channels on sublanes -> pad to 8 only

    # ---- parameter packing (tiny; channel-major: out-channels on rows) ----
    def padr(a, pad_value=0.0):           # pad leading (out-channel) dim to Cp
        return jnp.pad(a, ((0, Cp - a.shape[0]),) + ((0, 0),) * (a.ndim - 1),
                       constant_values=pad_value)

    def pad2(a, pad_value=0.0):           # pad both dims of a (Cout, Cout) mat
        return jnp.pad(a, ((0, Cp - a.shape[0]), (0, Cp - a.shape[1])),
                       constant_values=pad_value)

    w_in = jnp.concatenate([padr(w1.T), padr(ws.T)], axis=0).astype(matmul_dtype)  # (2Cp, Cin)
    b_in = jnp.concatenate([padr(b1.T), padr(bs.T)], axis=0).astype(jnp.float32)   # (2Cp, 1)
    w2t = pad2(w2.T).astype(matmul_dtype)                                          # (Cp, Cp)
    gam = pad2(gamma).astype(jnp.float32)                                          # (Cp, Cp) f32
    b2c = padr(b2.T).astype(jnp.float32)                                           # (Cp, 1)
    betc = padr(beta.T, pad_value=1.0).astype(jnp.float32)                         # (Cp, 1) keep nrm>0

    # ---- input glue: stride subsample only (no transpose, no padded rewrite).
    # TODO(synk): fold this strided slice into the kernel's input DMA (needs a
    # strided/Element index_map along H plus a strided lane read along W).
    x_sub = x_nchw[:, :, ::stride, ::stride]              # (N, Cin, Ho, Wo)
    Ho, Wo = x_sub.shape[2], x_sub.shape[3]
    P = Ho * Wo
    x_mat = x_sub.reshape(N, Cin, P).astype(matmul_dtype)  # channel-major, free reshape

    # ---- pixel-tile choice ----
    tp = min(tile_pixels, P)
    if N < 2 and P >= 256:                                  # >=2 grid steps for v7x megacore
        tp = min(tp, _round_up((P + 1) // 2, 128))
    if tp < P:
        tp = max(128, (tp // 128) * 128)                    # lane-dense pixel tiles
        t = tp
        while t > 128 and P % t != 0:                       # prefer an exact divisor
            t -= 128
        if P % t == 0:
            tp = t
    P_pad = _round_up(P, tp)
    if P_pad != P:
        x_mat = jnp.pad(x_mat, ((0, 0), (0, 0), (0, P_pad - P)))
    grid = (N, P_pad // tp)

    mm_b = jnp.dtype(matmul_dtype).itemsize
    out_b = jnp.dtype(out_dtype).itemsize
    cost = pl.CostEstimate(
        flops=2 * N * P_pad * (2 * Cp * Cin + 2 * Cp * Cp),
        transcendentals=N * P_pad * Cp,
        bytes_accessed=(N * Cin * P_pad * mm_b
                        + N * Cp * P_pad * out_b
                        + (2 * Cp * Cin + Cp * Cp) * mm_b
                        + (Cp * Cp + 4 * Cp) * 4),
    )

    full = lambda n, p: (0, 0)
    out = pl.pallas_call(
        _fused_block_kernel,
        out_shape=jax.ShapeDtypeStruct((N, Cp, P_pad), out_dtype),
        grid_spec=pltpu.PrefetchScalarGridSpec(
            num_scalar_prefetch=0,
            grid=grid,
            in_specs=[
                pl.BlockSpec((None, Cin, tp), lambda n, p: (n, 0, p)),  # x tile
                pl.BlockSpec((2 * Cp, Cin), full),                      # [W1^T ; Wskip^T]
                pl.BlockSpec((2 * Cp, 1), full),                        # [b1 ; b_skip]
                pl.BlockSpec((Cp, Cp), full),                           # W2^T
                pl.BlockSpec((Cp, 1), full),                            # b2
                pl.BlockSpec((Cp, Cp), full),                           # gamma (f32)
                pl.BlockSpec((Cp, 1), full),                            # beta
            ],
            out_specs=pl.BlockSpec((None, Cp, tp), lambda n, p: (n, 0, p)),
        ),
        compiler_params=pltpu.CompilerParams(
            dimension_semantics=("parallel", "parallel"),
            vmem_limit_bytes=48 * 1024 * 1024,
        ),
        cost_estimate=cost,
    )(x_mat, w_in, b_in, w2t, b2c, gam, betc)

    if Cp != Cout or P_pad != P:
        out = out[:, :Cout, :P]
    return out.reshape(N, Cout, Ho, Wo)                    # already NCHW


def make_params(key, in_ch, out_ch):
    """Deterministic synthetic parameters (shapes from the PyTorch module)."""
    k1, k2, k3, k4, k5, k6 = jax.random.split(key, 6)
    scale = 0.1
    # conv1: Conv2d(in_ch, out_ch, 1, stride=2)
    w1 = (scale * jax.random.normal(k1, (in_ch, out_ch))).astype(jnp.float32)
    b1 = (scale * jax.random.normal(k2, (1, out_ch))).astype(jnp.float32)
    # conv2: Conv2d(out_ch, out_ch, 1)
    w2 = (scale * jax.random.normal(k3, (out_ch, out_ch))).astype(jnp.float32)
    b2 = (scale * jax.random.normal(k4, (1, out_ch))).astype(jnp.float32)
    # GDN(out_ch): default init beta = 1, gamma = 0.1 * I  (compressai)
    gamma = (0.1 * jnp.eye(out_ch)).astype(jnp.float32)
    beta = jnp.ones((1, out_ch), dtype=jnp.float32)
    # skip: Conv2d(in_ch, out_ch, 1, stride=2)
    ws = (scale * jax.random.normal(k5, (in_ch, out_ch))).astype(jnp.float32)
    bs = (scale * jax.random.normal(k6, (1, out_ch))).astype(jnp.float32)
    return (w1, b1, w2, b2, gamma, beta, ws, bs)


def reference(x_nchw, params, stride=2):
    """Pure-JAX f32 reference of the PyTorch forward."""
    w1, b1, w2, b2, gamma, beta, ws, bs = params
    x = jnp.transpose(x_nchw, (0, 2, 3, 1))[:, ::stride, ::stride, :]
    h1 = x @ w1 + b1
    h1 = jnp.where(h1 >= 0, h1, 0.01 * h1)
    h2 = h1 @ w2 + b2
    nrm = (h2 * h2) @ gamma.T + beta
    gdn = h2 / jnp.sqrt(nrm)
    skip = x @ ws + bs
    out = gdn + skip
    return jnp.transpose(out, (0, 3, 1, 2))


if __name__ == "__main__":
    key = jax.random.PRNGKey(0)
    kx, kp = jax.random.split(key)

    N, in_ch, out_ch, H, W = 2, 4, 8, 16, 16
    x = jax.random.normal(kx, (N, in_ch, H, W), dtype=jnp.float32)
    params = make_params(kp, in_ch, out_ch)

    ref = reference(x, params, stride=2)

    # Exact-precision path (f32 matmul operands) — tight tolerance.
    out_f32 = residual_block_with_stride(x, params, stride=2,
                                         matmul_dtype=jnp.float32)
    out_f32 = jax.block_until_ready(out_f32)
    assert out_f32.shape == (N, out_ch, H // 2, W // 2)
    assert jnp.allclose(out_f32, ref, atol=1e-5, rtol=1e-5), "f32 mismatch vs reference"

    # Production path: bf16 MXU operands, f32 accumulation — looser tolerance.
    out_bf16 = residual_block_with_stride(x, params, stride=2,
                                          matmul_dtype=jnp.bfloat16)
    out_bf16 = jax.block_until_ready(out_bf16)
    assert out_bf16.shape == (N, out_ch, H // 2, W // 2)
    assert jnp.allclose(out_bf16, ref, atol=3e-2, rtol=3e-2), "bf16 mismatch vs reference"

    print("KERNEL_OK")
</pallas_src>

<mosaic_0001>
module attributes {stable_mosaic.version = 11 : i64} {
  func.func @_fused_block_kernel(%arg0: i32, %arg1: i32, %arg2: memref<1x4x64xf32, #tpu.memory_space<vmem>>, %arg3: memref<16x4xf32, #tpu.memory_space<vmem>>, %arg4: memref<16x1xf32, #tpu.memory_space<vmem>>, %arg5: memref<8x8xf32, #tpu.memory_space<vmem>>, %arg6: memref<8x1xf32, #tpu.memory_space<vmem>>, %arg7: memref<8x8xf32, #tpu.memory_space<vmem>>, %arg8: memref<8x1xf32, #tpu.memory_space<vmem>>, %arg9: memref<1x8x64xf32, #tpu.memory_space<vmem>>) attributes {dimension_semantics = [#tpu.dimension_semantics<parallel>, #tpu.dimension_semantics<parallel>], iteration_bounds = array<i64: 2, 1>, scalar_prefetch = 0 : i64, scratch_operands = 0 : i64, tpu.core_type = #tpu.core_type<tc>, window_params = [{transform_indices = @transform_0, window_bounds = array<i64: 1, 4, 64>}, {pipeline_mode = #tpu.pipeline_mode<synchronous>, transform_indices = @transform_1, window_bounds = array<i64: 16, 4>}, {pipeline_mode = #tpu.pipeline_mode<synchronous>, transform_indices = @transform_2, window_bounds = array<i64: 16, 1>}, {pipeline_mode = #tpu.pipeline_mode<synchronous>, transform_indices = @transform_3, window_bounds = array<i64: 8, 8>}, {pipeline_mode = #tpu.pipeline_mode<synchronous>, transform_indices = @transform_4, window_bounds = array<i64: 8, 1>}, {pipeline_mode = #tpu.pipeline_mode<synchronous>, transform_indices = @transform_5, window_bounds = array<i64: 8, 8>}, {pipeline_mode = #tpu.pipeline_mode<synchronous>, transform_indices = @transform_6, window_bounds = array<i64: 8, 1>}, {transform_indices = @transform_7, window_bounds = array<i64: 1, 8, 64>}]} {
    %c0 = arith.constant 0 : index
    %c0_0 = arith.constant 0 : index
    %c0_1 = arith.constant 0 : index
    %0 = vector.load %arg2[%c0, %c0_0, %c0_1] : memref<1x4x64xf32, #tpu.memory_space<vmem>>, vector<1x4x64xf32>
    %1 = vector.shape_cast %0 : vector<1x4x64xf32> to vector<4x64xf32>
    %c0_2 = arith.constant 0 : index
    %c0_3 = arith.constant 0 : index
    %2 = vector.load %arg3[%c0_2, %c0_3] : memref<16x4xf32, #tpu.memory_space<vmem>>, vector<16x4xf32>
    %cst = arith.constant dense<0.000000e+00> : vector<16x64xf32>
    %3 = tpu.matmul %2, %1, %cst {dimension_numbers = #tpu.dot_dimension_numbers<[1], [0], [0], [1], [0, 0, 1, 1], [], []>} : vector<16x4xf32>, vector<4x64xf32>, vector<16x64xf32> -> vector<16x64xf32>
    %c0_4 = arith.constant 0 : index
    %c0_5 = arith.constant 0 : index
    %4 = vector.load %arg4[%c0_4, %c0_5] : memref<16x1xf32, #tpu.memory_space<vmem>>, vector<16x1xf32>
    %5 = vector.broadcast %4 : vector<16x1xf32> to vector<16x64xf32>
    %6 = arith.addf %3, %5 : vector<16x64xf32>
    %7 = vector.extract_strided_slice %6 {offsets = [8, 0], sizes = [8, 64], strides = [1, 1]} : vector<16x64xf32> to vector<8x64xf32>
    %8 = vector.extract_strided_slice %6 {offsets = [0, 0], sizes = [8, 64], strides = [1, 1]} : vector<16x64xf32> to vector<8x64xf32>
    %cst_6 = arith.constant 0.000000e+00 : f32
    %9 = vector.broadcast %cst_6 : f32 to vector<8x64xf32>
    %10 = arith.cmpf oge, %8, %9 : vector<8x64xf32>
    %cst_7 = arith.constant 0.00999999977 : f32
    %11 = vector.broadcast %cst_7 : f32 to vector<8x64xf32>
    %12 = arith.mulf %11, %8 : vector<8x64xf32>
    %13 = arith.select %10, %8, %12 : vector<8x64xi1>, vector<8x64xf32>
    %c0_8 = arith.constant 0 : index
    %c0_9 = arith.constant 0 : index
    %14 = vector.load %arg5[%c0_8, %c0_9] : memref<8x8xf32, #tpu.memory_space<vmem>>, vector<8x8xf32>
    %cst_10 = arith.constant dense<0.000000e+00> : vector<8x64xf32>
    %15 = tpu.matmul %14, %13, %cst_10 {dimension_numbers = #tpu.dot_dimension_numbers<[1], [0], [0], [1], [0, 0, 1, 1], [], []>} : vector<8x8xf32>, vector<8x64xf32>, vector<8x64xf32> -> vector<8x64xf32>
    %c0_11 = arith.constant 0 : index
    %c0_12 = arith.constant 0 : index
    %16 = vector.load %arg6[%c0_11, %c0_12] : memref<8x1xf32, #tpu.memory_space<vmem>>, vector<8x1xf32>
    %17 = vector.broadcast %16 : vector<8x1xf32> to vector<8x64xf32>
    %18 = arith.addf %15, %17 : vector<8x64xf32>
    %c0_13 = arith.constant 0 : index
    %c0_14 = arith.constant 0 : index
    %19 = vector.load %arg7[%c0_13, %c0_14] : memref<8x8xf32, #tpu.memory_space<vmem>>, vector<8x8xf32>
    %20 = arith.mulf %18, %18 : vector<8x64xf32>
    %cst_15 = arith.constant dense<0.000000e+00> : vector<8x64xf32>
    %21 = tpu.matmul %19, %20, %cst_15 {dimension_numbers = #tpu.dot_dimension_numbers<[1], [0], [0], [1], [0, 0, 1, 1], [], []>} : vector<8x8xf32>, vector<8x64xf32>, vector<8x64xf32> -> vector<8x64xf32>
    %c0_16 = arith.constant 0 : index
    %c0_17 = arith.constant 0 : index
    %22 = vector.load %arg8[%c0_16, %c0_17] : memref<8x1xf32, #tpu.memory_space<vmem>>, vector<8x1xf32>
    %23 = vector.broadcast %22 : vector<8x1xf32> to vector<8x64xf32>
    %24 = arith.addf %21, %23 : vector<8x64xf32>
    %25 = math.rsqrt %24 : vector<8x64xf32>
    %26 = arith.mulf %18, %25 : vector<8x64xf32>
    %27 = arith.addf %26, %7 : vector<8x64xf32>
    %c0_18 = arith.constant 0 : index
    %c0_19 = arith.constant 0 : index
    %c0_20 = arith.constant 0 : index
    %28 = vector.load %arg9[%c0_18, %c0_19, %c0_20] : memref<1x8x64xf32, #tpu.memory_space<vmem>>, vector<1x8x64xf32>
    %29 = vector.shape_cast %28 : vector<1x8x64xf32> to vector<8x64xf32>
    %30 = vector.shape_cast %27 : vector<8x64xf32> to vector<1x8x64xf32>
    tpu.vector_store %arg9[%c0_18, %c0_19, %c0_20], %30 {strides = array<i32>} : memref<1x8x64xf32, #tpu.memory_space<vmem>>, vector<1x8x64xf32>,
    return
  }
  func.func @transform_0(%arg0: i32, %arg1: i32) -> (i32, i32, i32) {
    %c0_i32 = arith.constant 0 : i32
    %c0_i32_0 = arith.constant 0 : i32
    return %arg0, %c0_i32, %arg1 : i32, i32, i32
  }
  func.func @transform_1(%arg0: i32, %arg1: i32) -> (i32, i32) {
    %c0_i32 = arith.constant 0 : i32
    %c0_i32_0 = arith.constant 0 : i32
    %c0_i32_1 = arith.constant 0 : i32
    return %c0_i32, %c0_i32_0 : i32, i32
  }
  func.func @transform_2(%arg0: i32, %arg1: i32) -> (i32, i32) {
    %c0_i32 = arith.constant 0 : i32
    %c0_i32_0 = arith.constant 0 : i32
    %c0_i32_1 = arith.constant 0 : i32
    return %c0_i32, %c0_i32_0 : i32, i32
  }
  func.func @transform_3(%arg0: i32, %arg1: i32) -> (i32, i32) {
    %c0_i32 = arith.constant 0 : i32
    %c0_i32_0 = arith.constant 0 : i32
    %c0_i32_1 = arith.constant 0 : i32
    return %c0_i32, %c0_i32_0 : i32, i32
  }
  func.func @transform_4(%arg0: i32, %arg1: i32) -> (i32, i32) {
    %c0_i32 = arith.constant 0 : i32
    %c0_i32_0 = arith.constant 0 : i32
    %c0_i32_1 = arith.constant 0 : i32
    return %c0_i32, %c0_i32_0 : i32, i32
  }
  func.func @transform_5(%arg0: i32, %arg1: i32) -> (i32, i32) {
    %c0_i32 = arith.constant 0 : i32
    %c0_i32_0 = arith.constant 0 : i32
    %c0_i32_1 = arith.constant 0 : i32
    return %c0_i32, %c0_i32_0 : i32, i32
  }
  func.func @transform_6(%arg0: i32, %arg1: i32) -> (i32, i32) {
    %c0_i32 = arith.constant 0 : i32
    %c0_i32_0 = arith.constant 0 : i32
    %c0_i32_1 = arith.constant 0 : i32
    return %c0_i32, %c0_i32_0 : i32, i32
  }
  func.func @transform_7(%arg0: i32, %arg1: i32) -> (i32, i32, i32) {
    %c0_i32 = arith.constant 0 : i32
    %c0_i32_0 = arith.constant 0 : i32
    return %arg0, %c0_i32, %arg1 : i32, i32, i32
  }
}

</mosaic_0001>

<bundles_post_ra>
// kernel: tpu_custom_call.1
= control target key start
LH: loop header
LB: loop body
LE: loop exit
PB: predicated region body
PF: predicated region fallthrough
CT: control target
= control target key end

     0   :  { %12 = vsyncpa [#allocation3], 0  ;;  %s1003_s0 = inlined_call_operand.vmem [shape: f32[2,4,64], index: 0, kind: input, shape index: {}]   ;;  %s1004_s1 = inlined_call_operand.vmem [shape: f32[16,4], index: 1, kind: input, shape index: {}]   ;;  %s1005_s2 = inlined_call_operand.vmem [shape: f32[16,1], index: 2, kind: input, shape index: {}]   ;;  %s1006_s3 = inlined_call_operand.vmem [shape: f32[8,8], index: 3, kind: input, shape index: {}]   ;;  %s1007_s4 = inlined_call_operand.vmem [shape: f32[8,1], index: 4, kind: input, shape index: {}]   ;;  %s1008_s5 = inlined_call_operand.vmem [shape: f32[8,8], index: 5, kind: input, shape index: {}]   ;;  %s1009_s6 = inlined_call_operand.vmem [shape: f32[8,1], index: 6, kind: input, shape index: {}]   ;;  %s1010_s7 = inlined_call_operand.hbm [shape: f32[2,8,64], index: 7, kind: output, shape index: {}]  }
   0x1   :  { %14 = vsyncpa [#allocation3 + $0x1], 0  ;;  %s878_s24 = smov 0   ;;  %s880_s25 = smov 0  }
   0x2   :  { %s882_s26 = smov 0   ;;  %s884_s27 = smov 0  }
   0x3   :  { %s886_s28 = smov 0   ;;  %s888_s29 = smov 0  }
   0x4 LB: > { %s656_s30 = sadd.s32 4294967295, %s832_s29   ;;  %s657_s8 = sadd.s32 4294967294, %s832_s29   ;;  %s832_s29 = sphi %s888_s29, %s20_s29   ;;  %s828_s28 = sphi %s886_s28, %s1017_s28   ;;  %s824_s27 = sphi %s884_s27, %s1016_s27   ;;  %s820_s26 = sphi %s882_s26, %s1015_s26   ;;  %s816_s25 = sphi %s880_s25, %s1014_s25   ;;  %s812_s24 = sphi %s878_s24, %s1013_s24  }
   0x5   : > { %s32_s9 = sadd.s32 1, %s828_s28  ;;  %s195_s10 = sadd.s32 1, %s820_s26 }
   0x6   : > { %p34_p0 = scmp.ge.s32.totalorder %s32_s9, 2  ;;  %p205_p1 = scmp.ne.s32.totalorder %s820_s26, %s816_s25 }
   0x7   : > { %p206_p2 = scmp.eq.s32.totalorder %s656_s30, 1  ;;  %p211_p3 = scmp.ne.s32.totalorder %s816_s25, %s812_s24 }
   0x8   : > { %s1019_s9 = smov (%p34_p0, %s32_s9), 0  ;;  %p212_p5 = scmp.eq.s32.totalorder %s657_s8, 1 }
   0x9   : > { %p918_p4 = por %p206_p2, %p205_p1  ;;  %s190_s12 = ssub.s32 %s828_s28, %s1019_s9 }
   0xa   : > { %p660_p6 = scmp.ge.s32.totalorder %s832_s29, 1  ;;  %p193_p7 = scmp.eq.s32.totalorder %s190_s12, 0 }
   0xb   : > { %p925_p8 = por %p212_p5, %p211_p3  ;;  %p258_p9 = scmp.lt.s32.totalorder %s832_s29, 3 }
   0xc   : > { %s931_s14 = scalar_select %p193_p7, %s820_s26, %s195_s10  }
   0xd   : > { %p259_p10 = pnand %p660_p6, %p258_p9 }
   0xe   : > { %p292_p11 = scmp.lt.s32.totalorder (!%p259_p10), %s824_s27, 1  ;;  %s289_s23 = sand.u32 (!%p259_p10), 1, %s816_s25  }
   0xf   : > { %262 = sbr.rel (%p259_p10) target bundleno = 652 (0x28c), region = 48  ;;  %s669_s8 = sshll.u32 (!%p259_p10), %s824_s27, 7 }
  0x10   : > { %s583_s17 = scalar_lea.hbm (!%p259_p10), %s1010_s7, %s669_s8  ;;  %s571_s18 = scalar_lea.sflag (!%p259_p10), [#allocation3], %s289_s23 }
  0x11   : > { %s837_s20 = smov (!%p259_p10), [#allocation2]  }
  0x14   : > { %v300_v0 = vld [vmem:[%s1004_s1] sm:$0xff]  ;;  %vm314_vm0 = vcmask 31744   ;;  %v834_v1 = vmov 0   ;;  %s293_s21 = scalar_select %p292_p11, %s824_s27, 1  ;;  %v303_v4 = vld [vmem:[%s1005_s2 + $0x8] sm:$0xff]  ;;  %vm321_vm1 = vcmask 1043456  }
  0x15   : > { %681 = vmatprep.mubr.msk.f32.mxu0 %vm314_vm0, %v300_v0  ;;  %753 = vset.pattern.permute.xlu1 %v834_v1  ;;  %v486_v2 = vld [vmem:[%s1009_s6] sm:$0xff]  ;;  %v301_v7 = vld [vmem:[%s1004_s1 + $0x8] sm:$0xff]  ;;  %v835_v8 = vmov 0.0   ;;  %vm836_vm2 = vmmov 0   ;;  %vm410_vm4 = vcmask 64512   ;;  %vm568_vm5 = vcmask 523264  }
  0x16   : > { %v302_v3 = vld [vmem:[%s1005_s2] sm:$0xff]  ;;  %489 = vperm.xlu1 %753, %v486_v2   ;;  %752 = vset.pattern.permute.xlu0 %v834_v1  ;;  %s662_s30 = sshll.u32 %s293_s21, 2  ;;  %s760_s27 = sshll.u32 %s837_s20, 4  ;;  %s761_s27 = int_to_ptr.vmem [resolvable:$false] %s760_s27 }
  0x17   : > { %306 = vperm.xlu0 %752, %v302_v3   ;;  %v404_v5 = vld [vmem:[%s1007_s4] sm:$0xff]  ;;  %s298_s16 = scalar_lea.vmem %s1003_s0, %s662_s30  ;;  %684 = vmatprep.subr.mxu1 %v835_v8  ;;  %s661_s30 = sshll.u32 %s289_s23, 3 }
  0x18   : > { %v299_v6 = vld [vmem:[%s298_s16] sm:$0xf]  ;;  %686 = vmatprep.mubr.msk.f32.mxu1 %vm836_vm2, %v835_v8  ;;  %s291_s10 = scalar_lea.vmem [#allocation2], %s661_s30  ;;  %s762_s21 = scalar_lea.vmem %s761_s27, 256 }
  0x19   : > { %679 = vmatprep.subr.msk.mxu0 %vm321_vm1, %v299_v6  ;;  %v403_v14 = vld [vmem:[%s1006_s3] sm:$0xff]  ;;  %s585_s12 = sshll.u32 %s291_s10, 4  ;;  %s586_s12 = int_to_ptr.vmem [resolvable:$true] %s585_s12 }
  0x1a   : > { %311 = vperm.xlu1 %753, %v303_v4   ;;  %680 = vmatpush3.msk.msra.mxu0 %vm321_vm1, %v299_v6  ;;  %v484_v21 = vld [vmem:[%s1008_s5] sm:$0xff]  ;;  %s756_s19 = scalar_lea.vmem %s586_s12, 128  ;;  %p763_p1 = scmp.lt.s32.totalorder %s586_s12, %s761_s27 }
  0x1b   : > { %407 = vperm.xlu0 %752, %v404_v5   ;;  %682 = vmatmul.mubr.msk.f32.vlgmr.msra.gmra.mxu0 %vm314_vm0, %v301_v7  ;;  %p757_p12 = scmp.ne.s32.totalorder %s586_s12, %s756_s19  ;;  %p764_p2 = scmp.lt.s32.totalorder %s762_s21, %s756_s19 }
  0x1c   : > { %689 = vmatprep.subr.mxu0 %v835_v8  ;;  %691 = vmatprep.mubr.msk.f32.mxu0 %vm836_vm2, %v835_v8 }
  0x1d   : > { %p758_p13 = pnand %p757_p12, %p918_p4  ;;  %p765_p3 = por %p764_p2, %p763_p1 }
  0x1f   : > { %p759_p0 = pneg %p758_p13 }
  0x21   : > { %p766_p5 = pnand %p765_p3, %p759_p0 }
  0x91   : > { %v490_v22 = vpop.permute.xlu1 %489 }
  0x92   : > { %v307_v10 = vpop.permute.xlu0 %306 }
  0x95   : > { %v312_v26 = vpop.permute.xlu1 %311 }
  0x96   : > { %v408_v16 = vpop.permute.xlu0 %407 }
  0xdb   : > { %v683_v9 = vpop.f32.mrf.mxu0 }
  0xdc   : > { %v397_v28 = vadd.f32 %v683_v9, %v312_v26 }
  0xdd   : > { %v391_v11 = vpop.f32.mrf.mxu0 }
  0xde   : > { %v392_v12 = vadd.f32 %v391_v11, %v307_v10 }
  0xe0   : > { %vm400_vm3 = vcmp.ge.f32.partialorder %v392_v12, 0.0  ;;  %v401_v13 = vmul.f32 0.01, %v392_v12 }
  0xe2   : > { %v402_v15 = vsel %vm400_vm3, %v392_v12, %v401_v13 }
  0xe3   : > { %685 = vmatpush3.msra.mxu1 %v402_v15 }
  0xe4   : > { %687 = vmatmul.mubr.msk.f32.vlgmr.msra.gmra.mxu1 %vm410_vm4, %v403_v14 }
 0x1a4   : > { %v480_v17 = vpop.f32.mrf.mxu1 }
 0x1a5   : > { %v481_v18 = vadd.f32 %v480_v17, %v408_v16 }
 0x1a6   : > { %v688_v19 = vpop.f32.mrf.mxu1 }
 0x1a7   : > { %v485_v20 = vmul.f32 %v481_v18, %v481_v18 }
 0x1a9   : > { %690 = vmatpush3.msra.mxu0 %v485_v20 }
 0x1aa   : > { %692 = vmatmul.mubr.msk.f32.vlgmr.msra.gmra.mxu0 %vm410_vm4, %v484_v21 }
 0x26a   : > { %v561_v23 = vpop.f32.mrf.mxu0 }
 0x26b   : > { %v562_v24 = vadd.f32 %v561_v23, %v490_v22 }
 0x26c   : > { %v693_v25 = vpop.f32.mrf.mxu0 }
 0x26d   : > { %754 = vrsqrt.f32 %v562_v24 }
 0x27a   : > { %v755_v27 = vpop.eup %754 }
 0x27b   : > { %v566_v29 = vmul.f32 %v755_v27, %v481_v18 }
 0x27d   : > { %v567_v30 = vadd.f32 %v566_v29, %v397_v28 }
 0x27f   : > { %569 = vst.msk [vmem:[%s291_s10] sm:$0xff] %vm568_vm5, %v567_v30 }
 0x280   : > { %769 = shalt.err (!%p766_p5)
}
 0x281   : > { %s770_s22 = scalar_lea.hbm %s583_s17, 128  ;;  %s774_s8 = scalar_lea.hbm %s1010_s7, 256 }
 0x282   : > { %p771_p6 = scmp.ne.s32.totalorder %s583_s17, %s770_s22  ;;  %p775_p10 = scmp.lt.s32.totalorder %s583_s17, %s1010_s7 }
 0x283   : > { %p776_p11 = scmp.lt.s32.totalorder %s774_s8, %s770_s22 }
 0x284   : > { %p772_p7 = pnand %p771_p6, %p918_p4 }
 0x285   : > { %p777_p12 = por %p776_p11, %p775_p10 }
 0x286   : > { %p773_p9 = pneg %p772_p7 }
 0x288   : > { %p778_p13 = pnand %p777_p12, %p773_p9 }
 0x28a   : > { %781 = shalt.err (!%p778_p13)
}
 0x28b   : > { %694 = dma.vmem_to_hbm [thread:$0]  (%p918_p4), %s586_s12, 128, %s583_s17, %s571_s18  }
 0x28c PF: > { %p700_p0 = scmp.ge.s32.totalorder %s832_s29, 2  ;;  %s597_s16 = sand.u32 1, %s812_s24  }
 0x28d   : > { %s598_s19 = scalar_lea.sflag [#allocation3], %s597_s16 }
 0x28e   : > { %p697_p1 = pnand %p700_p0, %p925_p8 }
 0x290   : > { %p698_p2 = pneg %p697_p1 }
 0x292   : > { %807 = dma.done.wait (%p698_p2), %s598_s19, 128  }
 0x293   : > { %809 = vsyncadd (%p698_p2), %s598_s19, 4294967168  ;;  %s20_s29 = sadd.s32 1, %s832_s29   ;;  %s1013_s24 = smov %s816_s25 }
 0x294   : > { %p17_p3 = scmp.ge.s32.totalorder %s20_s29, 4   ;;  %s1014_s25 = smov %s820_s26 }
 0x295   : > { %s1015_s26 = smov %s931_s14  ;;  %s1016_s27 = smov %s828_s28 }
 0x296   : > { %s1017_s28 = smov %s1019_s9  ;;  %19 = sbr.rel (!%p17_p3) target bundleno = 4 (0x4), region = 83 }
 0x29b   :  { %603 = vsyncpa [#allocation3], 1 }
 0x29c   :  { %605 = vsyncpa [#allocation3 + $0x1], 1 }

</bundles_post_ra>
